<compile_context>
chip_gen: v6e
topology: v6e:2x2x1
jax: 0.10.0
libtpu: 0.0.40
codegen_flags: <defaults>
</compile_context>

<pallas_src>
import jax
import jax.numpy as jnp
from jax.experimental import pallas as pl
from jax.experimental.pallas import tpu as pltpu


def _outconv_vpu_kernel(w_ref, b_ref, x_ref, o_ref):
    """Small-channel path: unrolled VPU FMAs, pixels on the lane axis.

    w_ref: SMEM (Cout, Cin) f32   b_ref: SMEM (Cout,) f32
    x_ref: VMEM (1, Cin, T)       o_ref: VMEM (1, Cout, T)
    """
    cin = x_ref.shape[1]
    cout = o_ref.shape[1]
    tpix = x_ref.shape[2]
    x = x_ref[0].astype(jnp.float32)                       # (Cin, T)
    rows = []
    for co in range(cout):                                 # static unroll
        acc = jnp.full((1, tpix), b_ref[co], dtype=jnp.float32)
        for ci in range(cin):                              # static unroll
            acc = acc + w_ref[co, ci] * x[ci:ci + 1, :]
        rows.append(acc)
    o_ref[0] = jnp.concatenate(rows, axis=0).astype(o_ref.dtype)


def _outconv_mxu_kernel(w_ref, b_ref, x_ref, o_ref):
    """Large-channel path: (Cout, Cin) @ (Cin, T) on the MXU.

    w_ref: VMEM (Cout, Cin)       b_ref: VMEM (Cout, 1) f32
    x_ref: VMEM (1, Cin, T)       o_ref: VMEM (1, Cout, T)
    """
    acc = jnp.dot(w_ref[...], x_ref[0], preferred_element_type=jnp.float32)
    o_ref[0] = (acc + b_ref[...]).astype(o_ref.dtype)


def outconv_pallas(x_nchw, weight, bias, *, pixel_tile_target=2048):
    """1x1 Conv2d forward (NCHW in / NCHW out).

    x_nchw: (N, Cin, H, W)
    weight: (Cout, Cin, 1, 1)  -- PyTorch Conv2d weight layout
    bias:   (Cout,)
    """
    N, Cin, H, W = x_nchw.shape
    Cout = weight.shape[0]
    HW = H * W
    dtype = x_nchw.dtype
    itemsize = jnp.dtype(dtype).itemsize

    # Cheap views of the NCHW array -- no transpose, no padding.
    x_r = x_nchw.reshape(N, Cin, HW)
    w_mat = weight.reshape(Cout, Cin)

    # Lane-dense pixel tile: a multiple of 128, or the full H*W extent.
    if HW % 128 == 0:
        tile_pix = min(pixel_tile_target, HW)
    else:
        tile_pix = HW
    grid = (N, pl.cdiv(HW, tile_pix))

    use_vpu = max(Cin, Cout) <= 16
    if use_vpu:
        kernel = _outconv_vpu_kernel
        w_arg = w_mat.astype(jnp.float32)
        b_arg = bias.astype(jnp.float32)
        w_spec = pl.BlockSpec(memory_space=pltpu.MemorySpace.SMEM)
        b_spec = pl.BlockSpec(memory_space=pltpu.MemorySpace.SMEM)
    else:
        kernel = _outconv_mxu_kernel
        w_arg = w_mat
        b_arg = bias.reshape(Cout, 1).astype(jnp.float32)
        w_spec = pl.BlockSpec((Cout, Cin), lambda n, p: (0, 0))
        b_spec = pl.BlockSpec((Cout, 1), lambda n, p: (0, 0))

    # Double-buffered in/out blocks; leave headroom below scoped/physical caps
    # (48 MiB is safe on v5e/v6e/v7x).
    block_bytes = (Cin + Cout) * tile_pix * itemsize * 2
    vmem_limit = int(min(max(4 * block_bytes, 32 * 1024 * 1024),
                         48 * 1024 * 1024))

    cost = pl.CostEstimate(
        flops=2 * N * HW * Cin * Cout,
        transcendentals=0,
        bytes_accessed=(N * Cin * HW + N * Cout * HW) * itemsize
        + (Cout * Cin + Cout) * 4,
    )

    out_r = pl.pallas_call(
        kernel,
        out_shape=jax.ShapeDtypeStruct((N, Cout, HW), dtype),
        grid_spec=pltpu.PrefetchScalarGridSpec(
            num_scalar_prefetch=0,
            grid=grid,
            in_specs=[
                w_spec,
                b_spec,
                pl.BlockSpec((1, Cin, tile_pix), lambda n, p: (n, 0, p)),
            ],
            out_specs=pl.BlockSpec((1, Cout, tile_pix), lambda n, p: (n, 0, p)),
        ),
        compiler_params=pltpu.CompilerParams(
            dimension_semantics=("parallel", "parallel"),
            vmem_limit_bytes=vmem_limit,
        ),
        cost_estimate=cost,
    )(w_arg, b_arg, x_r)

    return out_r.reshape(N, Cout, H, W)


def outconv_reference(x_nchw, weight, bias):
    # Pure-JAX reference: per-pixel channel matmul (== 1x1 conv).
    w_mat = weight.reshape(weight.shape[0], weight.shape[1])  # (Cout, Cin)
    out = jnp.einsum("nchw,oc->nohw", x_nchw, w_mat) + bias[None, :, None, None]
    return out.astype(x_nchw.dtype)


if __name__ == "__main__":
    key = jax.random.PRNGKey(0)
    k_x, k_w, k_b, k_x2, k_w2, k_b2 = jax.random.split(key, 6)

    # --- Small-channel OutConv (exercises the VPU path; matches the module).
    N, Cin, Cout, H, W = 2, 4, 3, 16, 16
    x = jax.random.normal(k_x, (N, Cin, H, W), dtype=jnp.float32)
    bound = 1.0 / (Cin ** 0.5)
    weight = jax.random.uniform(k_w, (Cout, Cin, 1, 1), jnp.float32, -bound, bound)
    bias = jax.random.uniform(k_b, (Cout,), jnp.float32, -bound, bound)

    out = jax.block_until_ready(outconv_pallas(x, weight, bias))
    ref = outconv_reference(x, weight, bias)
    assert out.shape == (N, Cout, H, W), out.shape
    assert jnp.allclose(out, ref, atol=1e-5, rtol=1e-5), float(
        jnp.max(jnp.abs(out - ref)))

    # --- Larger-channel case (exercises the MXU path).
    N2, Cin2, Cout2, H2, W2 = 1, 64, 32, 16, 16
    x2 = jax.random.normal(k_x2, (N2, Cin2, H2, W2), dtype=jnp.float32)
    bound2 = 1.0 / (Cin2 ** 0.5)
    weight2 = jax.random.uniform(k_w2, (Cout2, Cin2, 1, 1), jnp.float32,
                                 -bound2, bound2)
    bias2 = jax.random.uniform(k_b2, (Cout2,), jnp.float32, -bound2, bound2)

    out2 = jax.block_until_ready(outconv_pallas(x2, weight2, bias2))
    ref2 = outconv_reference(x2, weight2, bias2)
    assert out2.shape == (N2, Cout2, H2, W2), out2.shape
    # Looser tolerance: MXU f32 matmuls may use reduced-precision passes that
    # differ slightly from the XLA einsum reference.
    assert jnp.allclose(out2, ref2, atol=2e-2, rtol=2e-2), float(
        jnp.max(jnp.abs(out2 - ref2)))

    print("KERNEL_OK")
</pallas_src>

<mosaic_0001>
module attributes {stable_mosaic.version = 11 : i64} {
  func.func @_outconv_vpu_kernel(%arg0: i32, %arg1: i32, %arg2: memref<3x4xf32, #tpu.memory_space<smem>>, %arg3: memref<3xf32, #tpu.memory_space<smem>>, %arg4: memref<1x4x256xf32, #tpu.memory_space<vmem>>, %arg5: memref<1x3x256xf32, #tpu.memory_space<vmem>>) attributes {dimension_semantics = [#tpu.dimension_semantics<parallel>, #tpu.dimension_semantics<parallel>], iteration_bounds = array<i64: 2, 1>, scalar_prefetch = 0 : i64, scratch_operands = 0 : i64, tpu.core_type = #tpu.core_type<tc>, window_params = [{transform_indices = @transform_0, window_bounds = array<i64: 3, 4>}, {transform_indices = @transform_1, window_bounds = array<i64: 3>}, {transform_indices = @transform_2, window_bounds = array<i64: 1, 4, 256>}, {transform_indices = @transform_3, window_bounds = array<i64: 1, 3, 256>}]} {
    %c0 = arith.constant 0 : index
    %c0_0 = arith.constant 0 : index
    %c0_1 = arith.constant 0 : index
    %0 = vector.load %arg4[%c0, %c0_0, %c0_1] : memref<1x4x256xf32, #tpu.memory_space<vmem>>, vector<1x4x256xf32>
    %1 = vector.shape_cast %0 : vector<1x4x256xf32> to vector<4x256xf32>
    %c0_2 = arith.constant 0 : index
    %2 = memref.load %arg3[%c0_2] : memref<3xf32, #tpu.memory_space<smem>>
    %3 = vector.broadcast %2 : f32 to vector<1x256xf32>
    %c0_3 = arith.constant 0 : index
    %c0_4 = arith.constant 0 : index
    %4 = memref.load %arg2[%c0_3, %c0_4] : memref<3x4xf32, #tpu.memory_space<smem>>
    %5 = vector.extract_strided_slice %1 {offsets = [0, 0], sizes = [1, 256], strides = [1, 1]} : vector<4x256xf32> to vector<1x256xf32>
    %6 = vector.broadcast %4 : f32 to vector<1x256xf32>
    %7 = arith.mulf %6, %5 : vector<1x256xf32>
    %8 = arith.addf %3, %7 : vector<1x256xf32>
    %c0_5 = arith.constant 0 : index
    %c1 = arith.constant 1 : index
    %9 = memref.load %arg2[%c0_5, %c1] : memref<3x4xf32, #tpu.memory_space<smem>>
    %10 = vector.extract_strided_slice %1 {offsets = [1, 0], sizes = [1, 256], strides = [1, 1]} : vector<4x256xf32> to vector<1x256xf32>
    %11 = vector.broadcast %9 : f32 to vector<1x256xf32>
    %12 = arith.mulf %11, %10 : vector<1x256xf32>
    %13 = arith.addf %8, %12 : vector<1x256xf32>
    %c0_6 = arith.constant 0 : index
    %c2 = arith.constant 2 : index
    %14 = memref.load %arg2[%c0_6, %c2] : memref<3x4xf32, #tpu.memory_space<smem>>
    %15 = vector.extract_strided_slice %1 {offsets = [2, 0], sizes = [1, 256], strides = [1, 1]} : vector<4x256xf32> to vector<1x256xf32>
    %16 = vector.broadcast %14 : f32 to vector<1x256xf32>
    %17 = arith.mulf %16, %15 : vector<1x256xf32>
    %18 = arith.addf %13, %17 : vector<1x256xf32>
    %c0_7 = arith.constant 0 : index
    %c3 = arith.constant 3 : index
    %19 = memref.load %arg2[%c0_7, %c3] : memref<3x4xf32, #tpu.memory_space<smem>>
    %20 = vector.extract_strided_slice %1 {offsets = [3, 0], sizes = [1, 256], strides = [1, 1]} : vector<4x256xf32> to vector<1x256xf32>
    %21 = vector.broadcast %19 : f32 to vector<1x256xf32>
    %22 = arith.mulf %21, %20 : vector<1x256xf32>
    %23 = arith.addf %18, %22 : vector<1x256xf32>
    %c1_8 = arith.constant 1 : index
    %24 = memref.load %arg3[%c1_8] : memref<3xf32, #tpu.memory_space<smem>>
    %25 = vector.broadcast %24 : f32 to vector<1x256xf32>
    %c1_9 = arith.constant 1 : index
    %c0_10 = arith.constant 0 : index
    %26 = memref.load %arg2[%c1_9, %c0_10] : memref<3x4xf32, #tpu.memory_space<smem>>
    %27 = vector.extract_strided_slice %1 {offsets = [0, 0], sizes = [1, 256], strides = [1, 1]} : vector<4x256xf32> to vector<1x256xf32>
    %28 = vector.broadcast %26 : f32 to vector<1x256xf32>
    %29 = arith.mulf %28, %27 : vector<1x256xf32>
    %30 = arith.addf %25, %29 : vector<1x256xf32>
    %c1_11 = arith.constant 1 : index
    %c1_12 = arith.constant 1 : index
    %31 = memref.load %arg2[%c1_11, %c1_12] : memref<3x4xf32, #tpu.memory_space<smem>>
    %32 = vector.extract_strided_slice %1 {offsets = [1, 0], sizes = [1, 256], strides = [1, 1]} : vector<4x256xf32> to vector<1x256xf32>
    %33 = vector.broadcast %31 : f32 to vector<1x256xf32>
    %34 = arith.mulf %33, %32 : vector<1x256xf32>
    %35 = arith.addf %30, %34 : vector<1x256xf32>
    %c1_13 = arith.constant 1 : index
    %c2_14 = arith.constant 2 : index
    %36 = memref.load %arg2[%c1_13, %c2_14] : memref<3x4xf32, #tpu.memory_space<smem>>
    %37 = vector.extract_strided_slice %1 {offsets = [2, 0], sizes = [1, 256], strides = [1, 1]} : vector<4x256xf32> to vector<1x256xf32>
    %38 = vector.broadcast %36 : f32 to vector<1x256xf32>
    %39 = arith.mulf %38, %37 : vector<1x256xf32>
    %40 = arith.addf %35, %39 : vector<1x256xf32>
    %c1_15 = arith.constant 1 : index
    %c3_16 = arith.constant 3 : index
    %41 = memref.load %arg2[%c1_15, %c3_16] : memref<3x4xf32, #tpu.memory_space<smem>>
    %42 = vector.extract_strided_slice %1 {offsets = [3, 0], sizes = [1, 256], strides = [1, 1]} : vector<4x256xf32> to vector<1x256xf32>
    %43 = vector.broadcast %41 : f32 to vector<1x256xf32>
    %44 = arith.mulf %43, %42 : vector<1x256xf32>
    %45 = arith.addf %40, %44 : vector<1x256xf32>
    %c2_17 = arith.constant 2 : index
    %46 = memref.load %arg3[%c2_17] : memref<3xf32, #tpu.memory_space<smem>>
    %47 = vector.broadcast %46 : f32 to vector<1x256xf32>
    %c2_18 = arith.constant 2 : index
    %c0_19 = arith.constant 0 : index
    %48 = memref.load %arg2[%c2_18, %c0_19] : memref<3x4xf32, #tpu.memory_space<smem>>
    %49 = vector.extract_strided_slice %1 {offsets = [0, 0], sizes = [1, 256], strides = [1, 1]} : vector<4x256xf32> to vector<1x256xf32>
    %50 = vector.broadcast %48 : f32 to vector<1x256xf32>
    %51 = arith.mulf %50, %49 : vector<1x256xf32>
    %52 = arith.addf %47, %51 : vector<1x256xf32>
    %c2_20 = arith.constant 2 : index
    %c1_21 = arith.constant 1 : index
    %53 = memref.load %arg2[%c2_20, %c1_21] : memref<3x4xf32, #tpu.memory_space<smem>>
    %54 = vector.extract_strided_slice %1 {offsets = [1, 0], sizes = [1, 256], strides = [1, 1]} : vector<4x256xf32> to vector<1x256xf32>
    %55 = vector.broadcast %53 : f32 to vector<1x256xf32>
    %56 = arith.mulf %55, %54 : vector<1x256xf32>
    %57 = arith.addf %52, %56 : vector<1x256xf32>
    %c2_22 = arith.constant 2 : index
    %c2_23 = arith.constant 2 : index
    %58 = memref.load %arg2[%c2_22, %c2_23] : memref<3x4xf32, #tpu.memory_space<smem>>
    %59 = vector.extract_strided_slice %1 {offsets = [2, 0], sizes = [1, 256], strides = [1, 1]} : vector<4x256xf32> to vector<1x256xf32>
    %60 = vector.broadcast %58 : f32 to vector<1x256xf32>
    %61 = arith.mulf %60, %59 : vector<1x256xf32>
    %62 = arith.addf %57, %61 : vector<1x256xf32>
    %c2_24 = arith.constant 2 : index
    %c3_25 = arith.constant 3 : index
    %63 = memref.load %arg2[%c2_24, %c3_25] : memref<3x4xf32, #tpu.memory_space<smem>>
    %64 = vector.extract_strided_slice %1 {offsets = [3, 0], sizes = [1, 256], strides = [1, 1]} : vector<4x256xf32> to vector<1x256xf32>
    %65 = vector.broadcast %63 : f32 to vector<1x256xf32>
    %66 = arith.mulf %65, %64 : vector<1x256xf32>
    %67 = arith.addf %62, %66 : vector<1x256xf32>
    %68 = tpu.concatenate %23, %45, %67 in 0 : vector<1x256xf32>, vector<1x256xf32>, vector<1x256xf32> -> vector<3x256xf32>
    %c0_26 = arith.constant 0 : index
    %c0_27 = arith.constant 0 : index
    %c0_28 = arith.constant 0 : index
    %69 = vector.load %arg5[%c0_26, %c0_27, %c0_28] : memref<1x3x256xf32, #tpu.memory_space<vmem>>, vector<1x3x256xf32>
    %70 = vector.shape_cast %69 : vector<1x3x256xf32> to vector<3x256xf32>
    %71 = vector.shape_cast %68 : vector<3x256xf32> to vector<1x3x256xf32>
    tpu.vector_store %arg5[%c0_26, %c0_27, %c0_28], %71 {strides = array<i32>} : memref<1x3x256xf32, #tpu.memory_space<vmem>>, vector<1x3x256xf32>,
    return
  }
  func.func @transform_0(%arg0: i32, %arg1: i32) -> (i32, i32) {
    %c0_i32 = arith.constant 0 : i32
    %c0_i32_0 = arith.constant 0 : i32
    %c0_i32_1 = arith.constant 0 : i32
    return %c0_i32, %c0_i32_0 : i32, i32
  }
  func.func @transform_1(%arg0: i32, %arg1: i32) -> i32 {
    %c0_i32 = arith.constant 0 : i32
    %c0_i32_0 = arith.constant 0 : i32
    return %c0_i32 : i32
  }
  func.func @transform_2(%arg0: i32, %arg1: i32) -> (i32, i32, i32) {
    %c0_i32 = arith.constant 0 : i32
    %c0_i32_0 = arith.constant 0 : i32
    return %arg0, %c0_i32, %arg1 : i32, i32, i32
  }
  func.func @transform_3(%arg0: i32, %arg1: i32) -> (i32, i32, i32) {
    %c0_i32 = arith.constant 0 : i32
    %c0_i32_0 = arith.constant 0 : i32
    return %arg0, %c0_i32, %arg1 : i32, i32, i32
  }
}

</mosaic_0001>

<bundles_post_ra>
// kernel: tpu_custom_call.1
= control target key start
LH: loop header
LB: loop body
LE: loop exit
PB: predicated region body
PF: predicated region fallthrough
CT: control target
= control target key end

     0   :  { %8 = vsyncpa [#allocation4], 0  ;;  %s892_s0 = inlined_call_operand.hbm [shape: f32[3,4], index: 0, kind: input, shape index: {}]   ;;  %s893_s1 = inlined_call_operand.vmem [shape: f32[3], index: 1, kind: input, shape index: {}]   ;;  %s894_s2 = inlined_call_operand.hbm [shape: f32[2,4,256], index: 2, kind: input, shape index: {}]   ;;  %s895_s3 = inlined_call_operand.vmem [shape: f32[2,3,256], index: 3, kind: output, shape index: {}]  }
   0x1   :  { %9 = vsyncpa [#allocation5], 0 }
   0x2   :  { %10 = vsyncpa [#allocation3], 0 }
   0x3   :  { %12 = vsyncpa [#allocation3 + $0x1], 0  ;;  %s750_s12 = smov 0   ;;  %s752_s13 = smov 0  }
   0x4   :  { %s754_s14 = smov 0   ;;  %s756_s15 = smov 0  }
   0x5   :  { %s758_s16 = smov 0   ;;  %s760_s17 = smov 0  }
   0x6 LB: > { %s496_s18 = sadd.s32 4294967295, %s725_s17   ;;  %p94_p0 = scmp.ne.s32.totalorder %s709_s13, %s705_s12  ;;  %s725_s17 = sphi %s760_s17, %s18_s17   ;;  %s721_s16 = sphi %s758_s16, %s906_s16   ;;  %s717_s15 = sphi %s756_s15, %s905_s15   ;;  %s713_s14 = sphi %s754_s14, %s904_s14   ;;  %s709_s13 = sphi %s752_s13, %s903_s13   ;;  %s705_s12 = sphi %s750_s12, %s902_s12  }
   0x7   : > { %p780_p1 = scmp.eq.s32.totalorder %s496_s18, 0  ;;  %p498_p2 = scmp.ge.s32.totalorder %s725_s17, 1 }
   0x8   : > { %p133_p3 = scmp.lt.s32.totalorder %s725_s17, 3  ;;  %s155_s24 = sshll.u32 %s893_s1, 4  ;;  %s156_s24 = int_to_ptr.vmem [resolvable:$true] %s155_s24 }
   0x9   : > { %p788_p4 = por %p780_p1, %p94_p0  ;;  %s30_s26 = sadd.s32 1, %s721_s16 }
   0xa   : > { %p792_p5 = pnand %p498_p2, %p133_p3  ;;  %p808_p8 = scmp.ge.s32.totalorder %s30_s26, 2 }
   0xb   : > { %s727_s28 = smov [#allocation2]   ;;  %s624_s4 = scalar_lea.vmem %s156_s24, 16 }
   0xc   : > { %p547_p6 = pneg %p792_p5  ;;  %p625_p9 = scmp.ne.s32.totalorder %s156_s24, %s624_s4 }
   0xd   : > { %p632_p13 = scmp.lt.s32.totalorder %s156_s24, %s156_s24  ;;  %p633_p0 = scmp.lt.s32.totalorder %s624_s4, %s624_s4 }
   0xe   : > { %p803_p7 = pnand %p547_p6, %p780_p1 }
   0xf   : > { %p634_p2 = por %p633_p0, %p632_p13 }
  0x10   : > { %550 = dma.hbm_to_smem (!%p803_p7), %s892_s0, 64, %s727_s28, [#allocation4]  }
  0x11   : > { %p626_p10 = pneg %p803_p7 }
  0x13   : > { %p627_p11 = pnand %p626_p10, %p625_p9 }
  0x15   : > { %p628_p12 = pneg %p627_p11 }
  0x17   : > { %p635_p3 = pnand %p634_p2, %p628_p12 }
  0x19   : > { %638 = shalt.err (!%p635_p3)
}
  0x1a   : > { %s728_s5 = smov [#allocation6]   ;;  %s908_s26 = smov (%p808_p8, %s30_s26), 0 }
  0x1b   : > { %553 = dma.vmem_to_smem (!%p803_p7), %s156_s24, 16, %s728_s5, [#allocation5]  }
  0x1c   : > { %s81_s6 = sadd.s32 1, %s713_s14  ;;  %p88_p6 = scmp.ne.s32.totalorder %s713_s14, %s709_s13 }
  0x1d   : > { %s76_s7 = ssub.s32 %s721_s16, %s908_s26  ;;  %p89_p9 = scmp.eq.s32.totalorder %s725_s17, 0 }
  0x1e   : > { %p79_p10 = scmp.eq.s32.totalorder %s76_s7, 0  ;;  %p560_p11 = scmp.lt.s32.totalorder %s725_s17, 2 }
  0x1f   : > { %p90_p12 = por %p89_p9, %p88_p6  ;;  %s166_s8 = sand.u32 1, %s713_s14  }
  0x20   : > { %s834_s9 = scalar_select %p79_p10, %s713_s14, %s81_s6  }
  0x21   : > { %s502_s10 = sshll.u32 %s166_s8, 3  ;;  %s535_s11 = sshll.u32 %s721_s16, 7 }
  0x22   : > { %s178_s22 = scalar_lea.hbm %s894_s2, %s535_s11  ;;  %s170_s23 = scalar_lea.vmem [#allocation7], %s502_s10 }
  0x23   : > { %s180_s24 = sshll.u32 %s170_s23, 4  ;;  %p840_p7 = pnand %p560_p11, %p90_p12  ;;  %s181_s24 = int_to_ptr.vmem [resolvable:$true] %s180_s24 }
  0x24   : > { %s167_s27 = scalar_lea.sflag [#allocation3], %s166_s8  ;;  %s652_s28 = scalar_lea.vmem %s181_s24, 128 }
  0x25   : > { %p641_p8 = pneg %p840_p7  ;;  %p653_p13 = scmp.ne.s32.totalorder %s181_s24, %s652_s28 }
  0x26   : > { %s729_s29 = smov [#allocation7]  }
  0x27   : > { %p655_p0 = pnand %p653_p13, %p641_p8  ;;  %s657_s30 = sshll.u32 %s729_s29, 4  ;;  %s658_s30 = int_to_ptr.vmem [resolvable:$false] %s657_s30 }
  0x28   : > { %s659_s4 = scalar_lea.vmem %s658_s30, 256  ;;  %p660_p3 = scmp.lt.s32.totalorder %s181_s24, %s658_s30 }
  0x29   : > { %p656_p2 = pneg %p655_p0  ;;  %p661_p6 = scmp.lt.s32.totalorder %s659_s4, %s652_s28 }
  0x2b   : > { %p662_p9 = por %p661_p6, %p660_p3 }
  0x2d   : > { %p663_p10 = pnand %p662_p9, %p656_p2 }
  0x2f   : > { %666 = shalt.err (!%p663_p10)
}
  0x30   : > { %557 = dma.hbm_to_vmem [thread:$0]  (!%p840_p7), %s178_s22, 128, %s181_s24, %s167_s27  }
  0x31   : > { %189 = sbr.rel (%p792_p5) target bundleno = 98 (0x62), region = 32 }
  0x36   : > { %692 = dma.done.wait (%p780_p1), [#allocation4], 64  }
  0x37   : > { %694 = vsyncadd (%p780_p1), [#allocation4], 4294967232 }
  0x38   : > { %696 = dma.done.wait (%p780_p1), [#allocation5], 16  }
  0x39   : > { %698 = vsyncadd (%p780_p1), [#allocation5], 4294967280  ;;  %s199_s5 = sand.u32 1, %s709_s13  }
  0x3a   : > { %s508_s6 = sshll.u32 %s199_s5, 3  ;;  %s200_s7 = scalar_lea.sflag [#allocation3], %s199_s5 }
  0x3b   : > { %s203_s8 = scalar_lea.vmem [#allocation7], %s508_s6 }
  0x3c   : > { %700 = dma.done.wait (%p788_p4), %s200_s7, 128  }
  0x3d   : > { %702 = vsyncadd (%p788_p4), %s200_s7, 4294967168 }
  0x3e   : > { %208 = sfence }
  0x3f   : > { %s243_s21 = sld [smem:[#allocation6]]  ;;  %v242_v0 = vld [vmem:[%s203_s8] sm:$0xff]  ;;  %v334_v8 = vlaneseq  ;;  %p233_p1 = scmp.lt.s32.totalorder %s717_s15, 1  ;;  %vm366_vm0 = vcmask 1040384   ;;  %vm369_vm1 = vcmask 1041408  }
  0x40   : > { %s245_s10 = sld [smem:[#allocation2]] }
  0x41   : > { %s511_s11 = sld [smem:[#allocation2 + $0x1]]  ;;  %v335_v19 = vshrl.u32 %v334_v8, 7  ;;  %s910_s15 = smov (!%p233_p1, %s717_s15), 1 }
  0x42   : > { %s513_s12 = sld [smem:[#allocation2 + $0x2]]  ;;  %s536_s4 = sshll.u32 %s910_s15, 3 }
  0x43   : > { %s515_s18 = sld [smem:[#allocation2 + $0x3]]  ;;  %v336_v32 = vsub.s32 0, %v335_v19  ;;  %v340_v40 = vsub.s32 4, %v335_v19  ;;  %s240_s7 = scalar_lea.vmem %s895_s3, %s536_s4 }
  0x44   : > { %s863_s19 = sld [smem:[#allocation6 + $0x1]] }
  0x45   : > { %v244_v1 = vstv %s243_s21  ;;  %s518_s22 = sld [smem:[#allocation2 + $0x80]] }
  0x46   : > { %v246_v2 = vstv %s245_s10  ;;  %s519_s23 = sld [smem:[#allocation2 + $0x81]] }
  0x47   : > { %v247_v3 = vmul.f32 %v246_v2, %v242_v0  ;;  %v250_v4 = vstv %s511_s11  ;;  %s521_s24 = sld [smem:[#allocation2 + $0x82]] }
  0x48   : > { %v251_v6 = vmul.f32 %v250_v4, %v242_v0  ;;  %v258_v7 = vstv %s513_s12  ;;  %s523_s20 = sld [smem:[#allocation2 + $0x83]] }
  0x49   : > { %v248_v5 = vadd.f32 %v247_v3, %v244_v1  ;;  %v259_v9 = vmul.f32 %v258_v7, %v242_v0  ;;  %v266_v10 = vstv %s515_s18  ;;  %s865_s25 = sld [smem:[#allocation6 + $0x2]] }
  0x4a   : > { %v512_v11 = vrot.slane %v251_v6, 9  ;;  %v267_v12 = vmul.f32 %v266_v10, %v242_v0  ;;  %s526_s27 = sld [smem:[#allocation2 + $0x100]]  ;;  %v274_v14 = vstv %s863_s19 }
  0x4b   : > { %v514_v13 = vrot.slane %v259_v9, 10  ;;  %v276_v15 = vstv %s518_s22  ;;  %s527_s28 = sld [smem:[#allocation2 + $0x101]] }
  0x4c   : > { %v256_v16 = vadd.f32 %v512_v11, %v248_v5  ;;  %v277_v17 = vmul.f32 %v276_v15, %v242_v0  ;;  %v280_v18 = vstv %s519_s23  ;;  %s529_s29 = sld [smem:[#allocation2 + $0x102]]  ;;  %v516_v20 = vrot.slane %v267_v12, 11 }
  0x4d   : > { %v281_v21 = vmul.f32 %v280_v18, %v242_v0  ;;  %v288_v22 = vstv %s521_s24  ;;  %s531_s30 = sld [smem:[#allocation2 + $0x103]] }
  0x4e   : > { %v264_v23 = vadd.f32 %v514_v13, %v256_v16  ;;  %v278_v24 = vadd.f32 %v277_v17, %v274_v14  ;;  %v289_v25 = vmul.f32 %v288_v22, %v242_v0  ;;  %v296_v26 = vstv %s523_s20 }
  0x4f   : > { %v520_v27 = vrot.slane %v281_v21, 9  ;;  %v297_v28 = vmul.f32 %v296_v26, %v242_v0  ;;  %v304_v30 = vstv %s865_s25 }
  0x50   : > { %v522_v29 = vrot.slane %v289_v25, 10  ;;  %v306_v31 = vstv %s526_s27  ;;  %v272_v37 = vadd.f32 %v516_v20, %v264_v23 }
  0x51   : > { %v286_v33 = vadd.f32 %v520_v27, %v278_v24  ;;  %v524_v34 = vrot.slane %v297_v28, 11  ;;  %v307_v35 = vmul.f32 %v306_v31, %v242_v0  ;;  %v310_v36 = vstv %s527_s28 }
  0x52   : > { %v311_v38 = vmul.f32 %v310_v36, %v242_v0  ;;  %v318_v39 = vstv %s529_s29  ;;  %v337_v51 = vrot.slane %v272_v37, %v336_v32  ;;  %v341_v52 = vrot.slane %v272_v37, %v340_v40 }
  0x53   : > { %v294_v41 = vadd.f32 %v522_v29, %v286_v33  ;;  %v308_v42 = vadd.f32 %v307_v35, %v304_v30  ;;  %v319_v43 = vmul.f32 %v318_v39, %v242_v0  ;;  %v326_v44 = vstv %s531_s30 }
  0x54   : > { %v528_v45 = vrot.slane %v311_v38, 9  ;;  %v327_v46 = vmul.f32 %v326_v44, %v242_v0 }
  0x55   : > { %v302_v47 = vadd.f32 %v524_v34, %v294_v41  ;;  %v530_v48 = vrot.slane %v319_v43, 10 }
  0x56   : > { %v316_v49 = vadd.f32 %v528_v45, %v308_v42  ;;  %v532_v50 = vrot.slane %v327_v46, 11 }
  0x57   : > { %v348_v53 = vrot.slane %v302_v47, %v336_v32  ;;  %v352_v54 = vrot.slane %v302_v47, %v340_v40 }
  0x58   : > { %v324_v55 = vadd.f32 %v530_v48, %v316_v49 }
  0x59   : > { %v367_v57 = vsel %vm366_vm0, %v337_v51, %v348_v53  ;;  %v368_v58 = vsel %vm366_vm0, %v341_v52, %v352_v54 }
  0x5a   : > { %v332_v56 = vadd.f32 %v532_v50, %v324_v55 }
  0x5c   : > { %v359_v59 = vrot.slane %v332_v56, %v336_v32  ;;  %v363_v60 = vrot.slane %v332_v56, %v340_v40 }
  0x5e   : > { %v370_v61 = vsel %vm369_vm1, %v367_v57, %v359_v59  ;;  %v371_v62 = vsel %vm369_vm1, %v368_v58, %v363_v60 }
  0x5f   : > { %v374_v63 = vcombine.low %v370_v61, %v371_v62 }
  0x61   : > { %376 = vst [vmem:[%s240_s7] sm:$0x77] %v374_v63 }
  0x62 PF: > { %s18_s17 = sadd.s32 1, %s725_s17   ;;  %s902_s12 = smov %s709_s13 }
  0x63   : > { %p15_p4 = scmp.ge.s32.totalorder %s18_s17, 4   ;;  %s903_s13 = smov %s713_s14 }
  0x64   : > { %s904_s14 = smov %s834_s9  ;;  %s905_s15 = smov %s721_s16 }
  0x65   : > { %s906_s16 = smov %s908_s26  ;;  %17 = sbr.rel (!%p15_p4) target bundleno = 6 (0x6), region = 82 }
  0x6a   :  { %407 = vsyncpa [#allocation3], 1 }
  0x6b   :  { %409 = vsyncpa [#allocation3 + $0x1], 1 }
  0x6c   :  { %410 = vsyncpa [#allocation4], 1 }
  0x6d   :  { %412 = vsyncpa [#allocation4 + $0x1], 1 }
  0x6e   :  { %413 = vsyncpa [#allocation5], 1 }
  0x6f   :  { %415 = vsyncpa [#allocation5 + $0x1], 1 }

</bundles_post_ra>
